<compile_context>
chip_gen: v7x
topology: tpu7x:2x2x1
jax: 0.10.0
libtpu: 0.0.40
codegen_flags: <defaults>
</compile_context>

<pallas_src>
import functools

import jax
import jax.numpy as jnp
import numpy as np
from jax import lax
from jax.experimental import pallas as pl
from jax.experimental.pallas import tpu as pltpu


def _block_mask_kernel(mask_ref, bm_ref, psum_ref, padbuf, *, block_size, H, W):
    """Per-n: separable max-pool of the Bernoulli mask -> block_mask + partial sum."""
    pad = block_size // 2

    # Re-zero the padded scratch every iteration (not just n == 0) so this grid
    # axis can be "parallel" (v7x megacore).  The buffer is small; cheap VPU work.
    padbuf[...] = jnp.zeros_like(padbuf)
    padbuf[pad:pad + H, pad:pad + W] = mask_ref[0]
    padded = padbuf[...]

    # NOTE: zero padding matches torch's max_pool2d padding only because the
    # mask is non-negative ({0, 1}).
    # Separable stride-1 (bs x bs) max pool: columns first, then rows
    # (2*(bs-1) maxima instead of bs^2-1).  For even block_size this keeps the
    # first H x W windows, matching the torch [:-1, :-1] crop.
    colmax = padded[:, 0:W]
    for dj in range(1, block_size):
        colmax = jnp.maximum(colmax, padded[:, dj:dj + W])
    pooled = colmax[0:H, :]
    for di in range(1, block_size):
        pooled = jnp.maximum(pooled, colmax[di:di + H, :])

    bm = 1.0 - pooled
    bm_ref[0] = bm
    psum_ref[...] = jnp.sum(bm).reshape(1, 1, 1)


def _apply_kernel(x_ref, bm_ref, scale_ref, out_ref):
    """out = x * block_mask * (numel / sum); lane-dense flattened blocks."""
    # bm_ref: (tn, 1, HW) f32; scale_ref: SMEM (1,) f32; x/out: (tn, tc, HW).
    # Scale multiply stays in f32; cast once at the final store.
    bm_scaled = bm_ref[...] * scale_ref[0]
    out_ref[...] = (x_ref[...] * bm_scaled).astype(out_ref.dtype)


def _choose_apply_tiles(N, C, HW, itemsize):
    """Pick (tn, tc) so the x block is a few MiB (near the HBM-roofline knee)
    while double-buffered in+out blocks stay well inside a 32 MiB scoped-VMEM
    budget (safe on v5e/v6e/v7x)."""
    sublane = 8 * max(1, 4 // itemsize)       # 8 f32 / 16 bf16 / 32 int8-fp8
    budget = 4 << 20                          # ~4 MiB per x block
    per_n = C * HW * itemsize
    if per_n <= budget:
        # Whole-C slab per n is small: batch over N to amortize per-step overhead.
        tn = max(1, min(N, budget // max(per_n, 1)))
        return tn, C
    # Per-n slab too big: tile channels, rounded to the dtype sublane multiple.
    tc = (budget // max(HW * itemsize, 1)) // sublane * sublane
    tc = min(C, max(tc, min(sublane, C)))
    # TODO(synk): for extreme H*W (one sublane group already > budget) also tile
    # the flattened HW axis in 128-multiple lane chunks.
    return 1, tc


def dropblock2d(x, rng_key, drop_prob, block_size, training=True, return_debug=False):
    assert x.ndim == 4, "Expected input with 4 dimensions (bsize, channels, height, width)"
    if (not training) or drop_prob == 0.0:
        return (x, None, None) if return_debug else x

    N, C, H, W = x.shape
    HW = H * W
    gamma = drop_prob / block_size ** 2
    pad = block_size // 2

    # Bernoulli(gamma) mask per (n, h, w), like `torch.rand(N, H, W) < gamma`.
    # TODO(synk): RNG stream differs from torch.rand; semantics (uniform < gamma) match.
    mask = (jax.random.uniform(rng_key, (N, H, W)) < gamma).astype(jnp.float32)

    kernel1 = functools.partial(_block_mask_kernel, block_size=block_size, H=H, W=W)
    block_mask, psums = pl.pallas_call(
        kernel1,
        out_shape=(
            jax.ShapeDtypeStruct((N, H, W), jnp.float32),   # block_mask
            jax.ShapeDtypeStruct((N, 1, 1), jnp.float32),   # per-n partial sums
        ),
        grid=(N,),
        in_specs=[pl.BlockSpec((1, H, W), lambda n: (n, 0, 0))],
        out_specs=(
            pl.BlockSpec((1, H, W), lambda n: (n, 0, 0)),
            pl.BlockSpec((1, 1, 1), lambda n: (n, 0, 0)),
        ),
        scratch_shapes=[pltpu.VMEM((H + 2 * pad, W + 2 * pad), jnp.float32)],
        compiler_params=pltpu.CompilerParams(dimension_semantics=("parallel",)),
    )(mask)

    # block_mask.numel() / block_mask.sum()  (tiny reduction over N partials;
    # like the torch reference, an all-dropped mask would give inf).
    scale = (jnp.asarray(N * H * W, jnp.float32) / jnp.sum(psums)).reshape(1)

    # ---- apply pass: lane-dense flattened spatial dim -----------------------
    x_flat = x.reshape(N, C, HW)              # contiguous, free reshapes
    bm3 = block_mask.reshape(N, 1, HW)

    itemsize = x.dtype.itemsize
    tn, tc = _choose_apply_tiles(N, C, HW, itemsize)

    out_flat = pl.pallas_call(
        _apply_kernel,
        out_shape=jax.ShapeDtypeStruct((N, C, HW), x.dtype),
        grid=(pl.cdiv(N, tn), pl.cdiv(C, tc)),
        in_specs=[
            pl.BlockSpec((tn, tc, HW), lambda n, c: (n, c, 0)),
            pl.BlockSpec((tn, 1, HW), lambda n, c: (n, 0, 0)),
            pl.BlockSpec(memory_space=pltpu.MemorySpace.SMEM),   # scalar scale
        ],
        out_specs=pl.BlockSpec((tn, tc, HW), lambda n, c: (n, c, 0)),
        compiler_params=pltpu.CompilerParams(
            dimension_semantics=("parallel", "parallel"),        # megacore on v7x
            vmem_limit_bytes=32 * 1024 * 1024,
        ),
        cost_estimate=pl.CostEstimate(
            flops=2 * N * C * HW,
            transcendentals=0,
            bytes_accessed=2 * N * C * HW * itemsize + N * HW * 4 + 4,
        ),
    )(x_flat, bm3, scale)

    out = out_flat.reshape(N, C, H, W)
    if return_debug:
        return out, block_mask, mask
    return out


def dropblock2d_ref(x, mask, block_size):
    """Pure-JAX reference mirroring the PyTorch forward (given the Bernoulli mask)."""
    pad = block_size // 2
    pooled = lax.reduce_window(
        mask, -jnp.inf, lax.max,
        window_dimensions=(1, block_size, block_size),
        window_strides=(1, 1, 1),
        padding=((0, 0), (pad, pad), (pad, pad)),
    )
    if block_size % 2 == 0:
        pooled = pooled[:, :-1, :-1]
    bm = 1.0 - pooled
    out = x * bm[:, None, :, :]
    return out * bm.size / jnp.sum(bm), bm


if __name__ == "__main__":
    N, C, H, W = 2, 4, 16, 16
    drop_prob, block_size = 0.1, 3

    key = jax.random.PRNGKey(0)
    xkey, mkey = jax.random.split(key)
    x = jax.random.normal(xkey, (N, C, H, W), dtype=jnp.float32)

    out, block_mask, mask = dropblock2d(
        x, mkey, drop_prob, block_size, training=True, return_debug=True)
    out = jax.block_until_ready(out)

    # correctness: rebuild the reference from the same Bernoulli mask
    ref_out, ref_bm = dropblock2d_ref(x, mask, block_size)
    np.testing.assert_allclose(np.asarray(block_mask), np.asarray(ref_bm),
                               rtol=1e-6, atol=1e-6)
    np.testing.assert_allclose(np.asarray(out), np.asarray(ref_out),
                               rtol=1e-5, atol=1e-5)

    print("KERNEL_OK")
</pallas_src>

<mosaic_0001>
module attributes {stable_mosaic.version = 11 : i64} {
  func.func @_block_mask_kernel(%arg0: i32, %arg1: memref<1x16x16xf32, #tpu.memory_space<vmem>>, %arg2: memref<1x16x16xf32, #tpu.memory_space<vmem>>, %arg3: memref<1x1x1xf32, #tpu.memory_space<vmem>>, %arg4: memref<18x18xf32, #tpu.memory_space<vmem>>) attributes {dimension_semantics = [#tpu.dimension_semantics<parallel>], iteration_bounds = array<i64: 2>, scalar_prefetch = 0 : i64, scratch_operands = 1 : i64, tpu.core_type = #tpu.core_type<tc>, window_params = [{transform_indices = @transform_0, window_bounds = array<i64: 1, 16, 16>}, {transform_indices = @transform_1, window_bounds = array<i64: 1, 16, 16>}, {transform_indices = @transform_2, window_bounds = array<i64: 1, 1, 1>}]} {
    %cst = arith.constant 0.000000e+00 : f32
    %0 = vector.broadcast %cst : f32 to vector<18x18xf32>
    %c0 = arith.constant 0 : index
    %c0_0 = arith.constant 0 : index
    %1 = vector.load %arg4[%c0, %c0_0] : memref<18x18xf32, #tpu.memory_space<vmem>>, vector<18x18xf32>
    tpu.vector_store %arg4[%c0, %c0_0], %0 {strides = array<i32>} : memref<18x18xf32, #tpu.memory_space<vmem>>, vector<18x18xf32>,
    %c0_1 = arith.constant 0 : index
    %c0_2 = arith.constant 0 : index
    %c0_3 = arith.constant 0 : index
    %2 = vector.load %arg1[%c0_1, %c0_2, %c0_3] : memref<1x16x16xf32, #tpu.memory_space<vmem>>, vector<1x16x16xf32>
    %3 = vector.shape_cast %2 : vector<1x16x16xf32> to vector<16x16xf32>
    %c1 = arith.constant 1 : index
    %c1_4 = arith.constant 1 : index
    %4 = vector.load %arg4[%c1, %c1_4] : memref<18x18xf32, #tpu.memory_space<vmem>>, vector<16x16xf32>
    tpu.vector_store %arg4[%c1, %c1_4], %3 {strides = array<i32>} : memref<18x18xf32, #tpu.memory_space<vmem>>, vector<16x16xf32>,
    %c0_5 = arith.constant 0 : index
    %c0_6 = arith.constant 0 : index
    %5 = vector.load %arg4[%c0_5, %c0_6] : memref<18x18xf32, #tpu.memory_space<vmem>>, vector<18x18xf32>
    %6 = vector.extract_strided_slice %5 {offsets = [0, 0], sizes = [18, 16], strides = [1, 1]} : vector<18x18xf32> to vector<18x16xf32>
    %7 = vector.extract_strided_slice %5 {offsets = [0, 1], sizes = [18, 16], strides = [1, 1]} : vector<18x18xf32> to vector<18x16xf32>
    %8 = arith.maximumf %6, %7 : vector<18x16xf32>
    %9 = vector.extract_strided_slice %5 {offsets = [0, 2], sizes = [18, 16], strides = [1, 1]} : vector<18x18xf32> to vector<18x16xf32>
    %10 = arith.maximumf %8, %9 : vector<18x16xf32>
    %11 = vector.extract_strided_slice %10 {offsets = [0, 0], sizes = [16, 16], strides = [1, 1]} : vector<18x16xf32> to vector<16x16xf32>
    %12 = vector.extract_strided_slice %10 {offsets = [1, 0], sizes = [16, 16], strides = [1, 1]} : vector<18x16xf32> to vector<16x16xf32>
    %13 = arith.maximumf %11, %12 : vector<16x16xf32>
    %14 = vector.extract_strided_slice %10 {offsets = [2, 0], sizes = [16, 16], strides = [1, 1]} : vector<18x16xf32> to vector<16x16xf32>
    %15 = arith.maximumf %13, %14 : vector<16x16xf32>
    %cst_7 = arith.constant 1.000000e+00 : f32
    %16 = vector.broadcast %cst_7 : f32 to vector<16x16xf32>
    %17 = arith.subf %16, %15 : vector<16x16xf32>
    %c0_8 = arith.constant 0 : index
    %c0_9 = arith.constant 0 : index
    %c0_10 = arith.constant 0 : index
    %18 = vector.load %arg2[%c0_8, %c0_9, %c0_10] : memref<1x16x16xf32, #tpu.memory_space<vmem>>, vector<1x16x16xf32>
    %19 = vector.shape_cast %18 : vector<1x16x16xf32> to vector<16x16xf32>
    %20 = vector.shape_cast %17 : vector<16x16xf32> to vector<1x16x16xf32>
    tpu.vector_store %arg2[%c0_8, %c0_9, %c0_10], %20 {strides = array<i32>} : memref<1x16x16xf32, #tpu.memory_space<vmem>>, vector<1x16x16xf32>,
    %21 = vector.shape_cast %17 : vector<16x16xf32> to vector<1x16x16xf32>
    %cst_11 = arith.constant dense<0.000000e+00> : vector<1xf32>
    %22 = vector.multi_reduction <add>, %21, %cst_11 [1, 2] : vector<1x16x16xf32> to vector<1xf32>
    %23 = vector.shape_cast %22 : vector<1xf32> to vector<1x1x1xf32>
    %24 = vector.extract %23[0, 0, 0] : f32 from vector<1x1x1xf32>
    %25 = vector.broadcast %24 : f32 to vector<1x1x1xf32>
    %c0_12 = arith.constant 0 : index
    %c0_13 = arith.constant 0 : index
    %c0_14 = arith.constant 0 : index
    %26 = vector.load %arg3[%c0_12, %c0_13, %c0_14] : memref<1x1x1xf32, #tpu.memory_space<vmem>>, vector<1x1x1xf32>
    tpu.vector_store %arg3[%c0_12, %c0_13, %c0_14], %25 {strides = array<i32>} : memref<1x1x1xf32, #tpu.memory_space<vmem>>, vector<1x1x1xf32>,
    return
  }
  func.func @transform_0(%arg0: i32) -> (i32, i32, i32) {
    %c0_i32 = arith.constant 0 : i32
    %c0_i32_0 = arith.constant 0 : i32
    %c0_i32_1 = arith.constant 0 : i32
    return %arg0, %c0_i32, %c0_i32_0 : i32, i32, i32
  }
  func.func @transform_1(%arg0: i32) -> (i32, i32, i32) {
    %c0_i32 = arith.constant 0 : i32
    %c0_i32_0 = arith.constant 0 : i32
    %c0_i32_1 = arith.constant 0 : i32
    return %arg0, %c0_i32, %c0_i32_0 : i32, i32, i32
  }
  func.func @transform_2(%arg0: i32) -> (i32, i32, i32) {
    %c0_i32 = arith.constant 0 : i32
    %c0_i32_0 = arith.constant 0 : i32
    %c0_i32_1 = arith.constant 0 : i32
    return %arg0, %c0_i32, %c0_i32_0 : i32, i32, i32
  }
}

</mosaic_0001>

<bundles_post_ra>
// kernel: tpu_custom_call.1
= control target key start
LH: loop header
LB: loop body
LE: loop exit
PB: predicated region body
PF: predicated region fallthrough
CT: control target
= control target key end

     0   :  { %8 = vsyncpa [#allocation4], 0  ;;  %s740_s0 = inlined_call_operand.hbm [shape: f32[2,16,16], index: 0, kind: input, shape index: {}]   ;;  %s741_s1 = inlined_call_operand.hbm [shape: f32[2,16,16], index: 1, kind: output, shape index: {0}]   ;;  %s742_s2 = inlined_call_operand.vmem [shape: f32[2,1,1], index: 2, kind: output, shape index: {1}]  }
   0x1   :  { %10 = vsyncpa [#allocation4 + $0x1], 0 }
   0x2   :  { %11 = vsyncpa [#allocation5], 0 }
   0x3   :  { %13 = vsyncpa [#allocation5 + $0x1], 0  ;;  %s569_s9 = smov 0   ;;  %s571_s10 = smov 0  }
   0x4   :  { %s573_s11 = smov 0   ;;  %s575_s12 = smov 0  }
   0x5 LB: > { %s590_s13 = sadd.s32 4294967295, %s542_s12   ;;  %s374_s14 = sadd.s32 4294967294, %s542_s12   ;;  %s542_s12 = sphi %s575_s12, %s755_s12   ;;  %s538_s11 = sphi %s573_s11, %s754_s11   ;;  %s534_s10 = sphi %s571_s10, %s753_s10   ;;  %s530_s9 = sphi %s569_s9, %s752_s9  }
   0x6   : > { %s594_s15 = sadd.s32 1, %s542_s12   ;;  %s26_s16 = sadd.s32 1, %s538_s11 }
   0x7   : > { %s23_s17 = ssub.s32 %s542_s12, %s594_s15  ;;  %p33_p0 = scmp.ne.s32.totalorder %s538_s11, %s534_s10 }
   0x8   : > { %p24_p1 = scmp.eq.s32.totalorder %s23_s17, 0  ;;  %p34_p2 = scmp.eq.s32.totalorder %s542_s12, 0 }
   0x9   : > { %p39_p3 = scmp.ne.s32.totalorder %s534_s10, %s530_s9  ;;  %p40_p4 = scmp.eq.s32.totalorder %s590_s13, 0 }
   0xa   : > { %s606_s18 = scalar_select %p24_p1, %s538_s11, %s26_s16  }
   0xb   : > { %p608_p5 = por %p34_p2, %p33_p0  ;;  %p612_p6 = por %p40_p4, %p39_p3 }
   0xc   : > { %p63_p7 = scmp.eq.s32.totalorder %s590_s13, 1  ;;  %p69_p8 = scmp.eq.s32.totalorder %s374_s14, 1 }
   0xd   : > { %p404_p10 = scmp.lt.s32.totalorder %s542_s12, 2  ;;  %s115_s23 = sand.u32 1, %s538_s11  }
   0xe   : > { %p619_p11 = por %p63_p7, %p33_p0  ;;  %p623_p12 = por %p69_p8, %p39_p3 }
   0xf   : > { %s388_s24 = sshll.u32 %s542_s12, 8  ;;  %s377_s25 = sshll.u32 %s115_s23, 4 }
  0x10   : > { %s746_s21 = scalar_select %p619_p11, 1, 0 }
  0x11   : > { %s747_s22 = scalar_select %p623_p12, 1, 0 }
  0x12   : > { %s632_s28 = scalar_lea.hbm %s740_s0, %s388_s24  ;;  %s119_s29 = scalar_lea.vmem [#allocation3], %s377_s25 }
  0x13   : > { %s126_s30 = sshll.u32 %s119_s29, 4  ;;  %p636_p13 = pnand %p404_p10, %p608_p5  ;;  %s640_s30 = int_to_ptr.vmem [resolvable:$true] %s126_s30 }
  0x14   : > { %s642_s4 = scalar_lea.sflag [#allocation4], %s115_s23  ;;  %s446_s5 = scalar_lea.hbm %s632_s28, 256 }
  0x15   : > { %p447_p0 = scmp.ne.s32.totalorder %s632_s28, %s446_s5  ;;  %p448_p1 = pneg %p636_p13 }
  0x16   : > { %s451_s8 = scalar_lea.hbm %s740_s0, 512  ;;  %p452_p4 = scmp.lt.u32.totalorder %s632_s28, %s740_s0 }
  0x17   : > { %p449_p2 = pnand %p448_p1, %p447_p0  ;;  %p453_p5 = scmp.lt.u32.totalorder %s451_s8, %s446_s5 }
  0x18   : > { %p455_p8 = scmp.lt.u32.totalorder %s446_s5, %s632_s28 }
  0x19   : > { %p450_p3 = pneg %p449_p2  ;;  %p454_p7 = por %p453_p5, %p452_p4 }
  0x1b   : > { %p456_p10 = por %p455_p8, %p454_p7 }
  0x1d   : > { %p457_p9 = pnand %p456_p10, %p450_p3 }
  0x1f   : > { %460 = shalt.err (!%p457_p9)
}
  0x20   : > { %s461_s17 = scalar_lea.vmem %s640_s30, 256  ;;  %s544_s19 = smov [#allocation3]  }
  0x21   : > { %p462_p0 = scmp.ne.s32.totalorder %s640_s30, %s461_s17  ;;  %s466_s23 = sshll.u32 %s544_s19, 4  ;;  %s467_s23 = int_to_ptr.vmem [resolvable:$false] %s466_s23 }
  0x22   : > { %s468_s24 = scalar_lea.vmem %s467_s23, 512  ;;  %p469_p11 = scmp.lt.s32.totalorder %s640_s30, %s467_s23 }
  0x23   : > { %p464_p2 = pnand %p462_p0, %p448_p1  ;;  %p470_p4 = scmp.lt.s32.totalorder %s468_s24, %s461_s17 }
  0x25   : > { %p465_p12 = pneg %p464_p2  ;;  %p471_p5 = por %p470_p4, %p469_p11 }
  0x27   : > { %p472_p7 = pnand %p471_p5, %p465_p12 }
  0x29   : > { %475 = shalt.err (!%p472_p7)
}
  0x2a   : > { %s545_s25 = smov 128   ;;  %s546_s26 = smov 8  }
  0x2b   : > { %399 = dma.hbm_to_vmem [thread:$0]  (!%p636_p13), %s632_s28, 256, %s640_s30, %s642_s4, %s545_s25, %s545_s25, %s546_s26  }
  0x2c   : > { %p380_p9 = scmp.ge.s32.totalorder %s542_s12, 1  ;;  %p134_p1 = scmp.lt.s32.totalorder %s542_s12, 3 }
  0x2e   : > { %p135_p3 = pnand %p380_p9, %p134_p1 }
  0x2f   : > { %s673_s27 = sand.u32 (!%p135_p3), 1, %s534_s10  }
  0x30   : > { %138 = sbr.rel (%p135_p3) target bundleno = 527 (0x20f), region = 24  ;;  %s381_s29 = sshll.u32 (!%p135_p3), %s673_s27, 4 }
  0x31   : > { %s141_s5 = scalar_lea.sflag (!%p135_p3), [#allocation4], %s673_s27  ;;  %s144_s6 = scalar_lea.vmem (!%p135_p3), [#allocation3], %s381_s29 }
  0x37   : > { %521 = dma.done.wait (%p612_p6), %s141_s5, 256  }
  0x38   : > { %523 = vsyncadd (%p612_p6), %s141_s5, 4294967040  ;;  %vm171_vm0 = vcmask 146432   ;;  %vm174_vm1 = vcmask 140288   ;;  %v547_v0 = vmov 0.0   ;;  %v176_v1 = vld [vmem:[%s144_s6] sm:$0xff]  ;;  %s548_s28 = smov 1  }
  0x39   : > { %172 = vst.msk [vmem:[#allocation2] sm:$0xff] %vm171_vm0, %v547_v0  ;;  %173 = vst.msk [vmem:[#allocation2 + $0x8] sm:$0xff] %vm171_vm0, %v547_v0  ;;  %180 = vrot.lane.b32.xlu0 %v176_v1, %s548_s28  ;;  %v177_v2 = vld [vmem:[%s144_s6 + $0x8] sm:$0xff]  ;;  %vm186_vm2 = vcmask 138248   ;;  %s549_s30 = smov 127   ;;  %s550_s20 = smov 126  }
  0x3a   : > { %175 = vst.msk [vmem:[#allocation2 + $0x10] sm:$0x3] %vm174_vm1, %v547_v0  ;;  %vm222_vm3 = vcmask 1046528   ;;  %vm232_vm4 = vcmask 1045504   ;;  %vm244_vm5 = vcmask 130048   ;;  %s162_s3 = scalar_lea.vmem [#allocation6], %s381_s29 }
  0x3b   : > { %s389_s4 = sshll.u32 %s590_s13, 8  ;;  %s279_s7 = sshll.u32 %s162_s3, 4  ;;  %s691_s7 = int_to_ptr.vmem [resolvable:$true] %s279_s7 }
  0x3c   : > { %s689_s16 = scalar_lea.hbm %s741_s1, %s389_s4  ;;  %s263_s17 = scalar_lea.sflag [#allocation5], %s673_s27 }
  0x3d   : > { %182 = vrot.lane.b32.xlu0 %v177_v2, %s548_s28  ;;  %s476_s19 = scalar_lea.vmem %s691_s7, 256  ;;  %p749_p11 = scmp.ne.s32.totalorder %s746_s21, 0 }
  0x3e   : > { %p477_p6 = scmp.ne.s32.totalorder %s691_s7, %s476_s19  ;;  %s551_s23 = smov [#allocation6]  }
  0x3f   : > { %s480_s24 = sshll.u32 %s551_s23, 4  ;;  %s481_s24 = int_to_ptr.vmem [resolvable:$false] %s480_s24 }
  0x40   : > { %p478_p12 = pnand %p477_p6, %p749_p11  ;;  %s482_s25 = scalar_lea.vmem %s481_s24, 512 }
  0x41   : > { %p483_p8 = scmp.lt.s32.totalorder %s691_s7, %s481_s24  ;;  %p484_p10 = scmp.lt.s32.totalorder %s482_s25, %s476_s19 }
  0x42   : > { %p479_p13 = pneg %p478_p12 }
  0x43   : > { %p485_p0 = por %p484_p10, %p483_p8 }
  0x45   : > { %p486_p2 = pnand %p485_p0, %p479_p13 }
  0xab   : > { %v181_v3 = vpop.permute.xlu0 %180 }
  0xac   : > { %187 = vst.msk [vmem:[#allocation2 + $0x1] sm:$0xff] %vm186_vm2, %v181_v3 }
  0xaf   : > { %v183_v4 = vpop.permute.xlu0 %182 }
  0xb0   : > { %188 = vst.msk [vmem:[#allocation2 + $0x9] sm:$0xff] %vm186_vm2, %v183_v4 }
  0xb3   : > { %v189_v5 = vld [vmem:[#allocation2] sm:$0xff] }
  0xb4   : > { %195 = vrot.lane.b32.xlu1 %v189_v5, %s549_s30 }
  0xb7   : > { %v191_v6 = vld [vmem:[#allocation2 + $0x10] sm:$0x3]  ;;  %v190_v7 = vld [vmem:[#allocation2 + $0x8] sm:$0xff] }
  0xb8   : > { %199 = vrot.lane.b32.xlu0 %v191_v6, %s549_s30  ;;  %197 = vrot.lane.b32.xlu1 %v190_v7, %s549_s30 }
  0xbc   : > { %209 = vrot.lane.b32.xlu0 %v190_v7, %s550_s20  ;;  %207 = vrot.lane.b32.xlu1 %v189_v5, %s550_s20 }
  0xc0   : > { %211 = vrot.lane.b32.xlu1 %v191_v6, %s550_s20 }
 0x126   : > { %v196_v8 = vpop.permute.xlu1 %195 }
 0x127   : > { %v204_v11 = vmax.f32 %v189_v5, %v196_v8 }
 0x12a   : > { %v200_v9 = vpop.permute.xlu0 %199  ;;  %v198_v10 = vpop.permute.xlu1 %197 }
 0x12b   : > { %v205_v12 = vmax.f32 %v190_v7, %v198_v10  ;;  %v206_v17 = vmax.f32 %v191_v6, %v200_v9 }
 0x12e   : > { %v210_v13 = vpop.permute.xlu0 %209  ;;  %v208_v14 = vpop.permute.xlu1 %207 }
 0x12f   : > { %v217_v15 = vmax.f32 %v205_v12, %v210_v13  ;;  %v216_v16 = vmax.f32 %v204_v11, %v208_v14 }
 0x131   : > { %v224_v18 = vrot.slane %v217_v15, 1  ;;  %v234_v19 = vrot.slane %v217_v15, 2  ;;  %v223_v20 = vrot.slane %v216_v16, 1  ;;  %v233_v21 = vrot.slane %v216_v16, 2 }
 0x132   : > { %v212_v22 = vpop.permute.xlu1 %211 }
 0x133   : > { %v225_v23 = vsel %vm222_vm3, %v223_v20, %v224_v18  ;;  %v218_v24 = vmax.f32 %v206_v17, %v212_v22  ;;  %v235_v28 = vsel %vm232_vm4, %v233_v21, %v234_v19 }
 0x134   : > { %v230_v25 = vmax.f32 %v216_v16, %v225_v23 }
 0x135   : > { %v226_v26 = vrot.slane %v218_v24, 1  ;;  %v236_v27 = vrot.slane %v218_v24, 2 }
 0x136   : > { %v240_v29 = vmax.f32 %v230_v25, %v235_v28 }
 0x137   : > { %v227_v30 = vsel %vm222_vm3, %v224_v18, %v226_v26  ;;  %v237_v33 = vsel %vm232_vm4, %v234_v19, %v236_v27 }
 0x138   : > { %v231_v31 = vmax.f32 %v217_v15, %v227_v30  ;;  %v242_v32 = vsub.f32 1.0, %v240_v29 }
 0x13a   : > { %v241_v34 = vmax.f32 %v231_v31, %v237_v33  ;;  %245 = vst.msk [vmem:[%s162_s3] sm:$0xff] %vm244_vm5, %v242_v32  ;;  %v247_v36 = vsel %vm244_vm5, %v242_v32, 0.0 }
 0x13c   : > { %v243_v35 = vsub.f32 1.0, %v241_v34 }
 0x13e   : > { %v248_v37 = vsel %vm244_vm5, %v243_v35, 0.0  ;;  %246 = vst.msk [vmem:[%s162_s3 + $0x8] sm:$0xff] %vm244_vm5, %v243_v35 }
 0x13f   : > { %v249_v38 = vadd.f32 %v248_v37, %v247_v36 }
 0x141   : > { %250 = vadd.xlane.f32.xlu0 %v249_v38 }
 0x142   : > { %489 = shalt.err (!%p486_p2)
}
 0x143   : > { %s490_s26 = scalar_lea.hbm %s689_s16, 256  ;;  %s494_s6 = scalar_lea.hbm %s741_s1, 512 }
 0x144   : > { %p491_p4 = scmp.ne.s32.totalorder %s689_s16, %s490_s26  ;;  %p495_p9 = scmp.lt.u32.totalorder %s689_s16, %s741_s1 }
 0x145   : > { %p496_p1 = scmp.lt.u32.totalorder %s494_s6, %s490_s26  ;;  %p498_p6 = scmp.lt.u32.totalorder %s490_s26, %s689_s16 }
 0x146   : > { %p492_p5 = pnand %p491_p4, %p749_p11 }
 0x147   : > { %p497_p3 = por %p496_p1, %p495_p9 }
 0x148   : > { %p493_p7 = pneg %p492_p5 }
 0x149   : > { %p499_p12 = por %p498_p6, %p497_p3 }
 0x14b   : > { %p500_p13 = pnand %p499_p12, %p493_p7 }
 0x14d   : > { %503 = shalt.err (!%p500_p13)
}
 0x14e   : > { %s552_s20 = smov 128   ;;  %s553_s3 = smov 8   ;;  %vm260_vm6 = vcmask 0  }
 0x14f   : > { %394 = dma.vmem_to_hbm [thread:$0]  (%p749_p11), %s691_s7, 256, %s689_s16, %s263_s17, %s552_s20, %s552_s20, %s553_s3  }
 0x150   : > { %p168_p8 = scmp.lt.s32.totalorder %s590_s13, 1 }
 0x152   : > { %s757_s13 = smov (!%p168_p8, %s590_s13), 1 }
 0x153   : > { %s170_s14 = scalar_lea.vmem %s742_s2, %s757_s13 }
 0x1ce   : > { %v251_v39 = vpop.xlane.xlu0 %250 }
 0x1cf   : > { %v252_v40 = vrot.slane %v251_v39, 4 }
 0x1d1   : > { %v253_v41 = vadd.f32 %v252_v40, %v251_v39 }
 0x1d3   : > { %v254_v42 = vrot.slane %v253_v41, 2 }
 0x1d5   : > { %v255_v43 = vadd.f32 %v254_v42, %v253_v41 }
 0x1d7   : > { %v256_v44 = vrot.slane %v255_v43, 1 }
 0x1d9   : > { %v257_v45 = vadd.f32 %v256_v44, %v255_v43 }
 0x1db   : > { %390 = vpush %v257_v45 }
 0x20c   : > { %s391_s19 = spop %390 }
 0x20d   : > { %v259_v46 = vstv %s391_s19 }
 0x20e   : > { %261 = vst.msk [vmem:[%s170_s14] sm:$0x1] %vm260_vm6, %v259_v46 }
 0x20f PF: > { %s297_s21 = sand.u32 1, %s530_s9   ;;  %p750_p11 = scmp.ne.s32.totalorder %s747_s22, 0 }
 0x210   : > { %p751_p10 = scmp.ge.s32.totalorder %s542_s12, 2  ;;  %s298_s27 = scalar_lea.sflag [#allocation5], %s297_s21 }
 0x212   : > { %p401_p0 = pnand %p751_p10, %p750_p11 }
 0x214   : > { %525 = dma.done.wait (!%p401_p0), %s298_s27, 256  }
 0x215   : > { %527 = vsyncadd (!%p401_p0), %s298_s27, 4294967040  ;;  %p16_p2 = scmp.ge.s32.totalorder %s594_s15, 4   ;;  %s752_s9 = smov %s534_s10 }
 0x216   : > { %s753_s10 = smov %s538_s11  ;;  %s754_s11 = smov %s606_s18 }
 0x217   : > { %s755_s12 = smov %s594_s15  ;;  %18 = sbr.rel (!%p16_p2) target bundleno = 5 (0x5), region = 81 }
 0x21e   :  { %309 = vsyncpa [#allocation4], 1 }
 0x21f   :  { %311 = vsyncpa [#allocation4 + $0x1], 1 }
 0x220   :  { %312 = vsyncpa [#allocation5], 1 }
 0x221   :  { %314 = vsyncpa [#allocation5 + $0x1], 1 }

</bundles_post_ra>
